<compile_context>
chip_gen: v5e
topology: v5e:2x2
jax: 0.10.0
libtpu: 0.0.40
codegen_flags: <defaults>
</compile_context>

<pallas_src>
import functools

import jax
import jax.numpy as jnp
from jax.experimental import pallas as pl
from jax.experimental.pallas import tpu as pltpu


def _pointnet_kernel(x_ref, w_in_ref, b_in_ref, w_l_ref, b_l_ref,
                     w_gl_ref, w_gg_ref, b_g_ref, w_out_ref, b_out_ref,
                     g_ref, pp_ref, *, num_layers, batch_tile):
    """One grid step = `batch_tile` point clouds (NCL), fully resident in VMEM."""

    def relu(v):                                   # LeakyReLU(negative_slope=0.0)
        return jnp.maximum(v, 0.0)

    def mm(a, b):                                  # Conv1d(k=1) == matmul (MXU)
        return jnp.dot(a, b, preferred_element_type=jnp.float32)

    for bb in range(batch_tile):                   # static unroll over batch tile
        x = x_ref[bb]                              # (C_in, N)
        y = relu(mm(w_in_ref[...], x) + b_in_ref[...])        # (h, N)

        acc = None
        for i in range(num_layers):                # statically unrolled
            y = relu(mm(w_l_ref[i], y) + b_l_ref[i])          # (h, N)
            y_glob = jnp.max(y, axis=-1, keepdims=True)       # (h, 1) lane reduce
            g_term = mm(w_gg_ref[i], y_glob) + b_g_ref[i]     # (h, 1)
            y = relu(mm(w_gl_ref[i], y) + g_term)             # (h, N)
            t = mm(w_out_ref[i], y)                           # (c, N) partial conv_out
            acc = t if acc is None else acc + t

        xo = acc + b_out_ref[...]                             # (c, N)
        pp_ref[bb] = xo                                       # per-point features
        g_ref[bb] = jnp.max(xo, axis=-1, keepdims=True)       # (c, 1) global feature


def _pick_batch_tile(B):
    # Amortize per-grid-step overhead, but keep >= 2 grid steps (v7x has 2 TCs).
    for tb in (4, 2):
        if B % tb == 0 and B // tb >= 2:
            return tb
    return 1


def pointnet_encoder_forward(x_ncl, params, ret_perpoint_feat=False,
                             batch_tile=None):
    """x_ncl: (B, C_in, N) float32 — same NCL convention as the PyTorch module."""
    w_in, b_in, w_l, b_l, w_g, b_g, w_out, b_out = params
    B, C_in, N = x_ncl.shape
    L, h = w_l.shape[0], w_l.shape[1]
    c = w_out.shape[0]

    if batch_tile is None:
        batch_tile = _pick_batch_tile(B)
    assert B % batch_tile == 0

    x = x_ncl.astype(jnp.float32)                  # stays NCL; no boundary transpose

    # Trace-time parameter prep (free): biases as broadcastable columns,
    # global-conv weights split into local/global halves, conv_out split
    # into per-layer chunks.
    b_in2 = b_in.reshape(h, 1)
    b_l2 = b_l.reshape(L, h, 1)
    b_g2 = b_g.reshape(L, h, 1)
    b_out2 = b_out.reshape(c, 1)
    w_g_loc = w_g[:, :, :h]                                    # (L, h, h)
    w_g_glob = w_g[:, :, h:]                                   # (L, h, h)
    w_out_split = jnp.transpose(w_out.reshape(c, L, h), (1, 0, 2))   # (L, c, h)

    def full_spec(a):
        nd = a.ndim
        return pl.BlockSpec(a.shape, lambda b, _nd=nd: (0,) * _nd)

    kernel = functools.partial(_pointnet_kernel, num_layers=L,
                               batch_tile=batch_tile)

    g, pp = pl.pallas_call(
        kernel,
        out_shape=(jax.ShapeDtypeStruct((B, c, 1), jnp.float32),
                   jax.ShapeDtypeStruct((B, c, N), jnp.float32)),
        grid=(B // batch_tile,),
        in_specs=[
            pl.BlockSpec((batch_tile, C_in, N), lambda b: (b, 0, 0)),
            full_spec(w_in), full_spec(b_in2),
            full_spec(w_l), full_spec(b_l2),
            full_spec(w_g_loc), full_spec(w_g_glob), full_spec(b_g2),
            full_spec(w_out_split), full_spec(b_out2),
        ],
        out_specs=(
            pl.BlockSpec((batch_tile, c, 1), lambda b: (b, 0, 0)),
            pl.BlockSpec((batch_tile, c, N), lambda b: (b, 0, 0)),
        ),
        compiler_params=pltpu.CompilerParams(dimension_semantics=("parallel",)),
    )(x, w_in, b_in2, w_l, b_l2, w_g_loc, w_g_glob, b_g2, w_out_split, b_out2)

    ret = {"global": g[:, :, 0]}                   # (B, c_dim)
    if ret_perpoint_feat:
        ret["per_point"] = pp                      # (B, c_dim, N) == PyTorch layout
    # TODO(synk): per_point=True branch (final_conv over the point axis) not
    # wired up; this script exercises the per_point=False configuration.
    return ret


def init_params(key, c_in=3, h_dim=32, c_dim=32, num_layers=4):
    ks = jax.random.split(key, 8)

    def w(k, shape, fan_in):
        return jax.random.normal(k, shape, jnp.float32) / jnp.sqrt(float(fan_in))

    w_in = w(ks[0], (h_dim, c_in), c_in)
    b_in = w(ks[1], (h_dim,), c_in)
    w_l = w(ks[2], (num_layers, h_dim, h_dim), h_dim)
    b_l = w(ks[3], (num_layers, h_dim), h_dim)
    w_g = w(ks[4], (num_layers, h_dim, 2 * h_dim), 2 * h_dim)
    b_g = w(ks[5], (num_layers, h_dim), 2 * h_dim)
    w_out = w(ks[6], (c_dim, h_dim * num_layers), h_dim * num_layers)
    b_out = w(ks[7], (c_dim,), h_dim * num_layers)
    return (w_in, b_in, w_l, b_l, w_g, b_g, w_out, b_out)


def _reference_forward(x_ncl, params, num_layers):
    """Pure-JAX reference mirroring the PyTorch module (per_point=False)."""
    w_in, b_in, w_l, b_l, w_g, b_g, w_out, b_out = params
    relu = lambda v: jnp.maximum(v, 0.0)
    conv = lambda v, w, b: jnp.einsum("bcn,oc->bon", v, w) + b[None, :, None]
    y = relu(conv(x_ncl, w_in, b_in))
    feats = []
    for i in range(num_layers):
        y = relu(conv(y, w_l[i], b_l[i]))
        y_glob = jnp.max(y, axis=-1, keepdims=True)
        y = jnp.concatenate([y, jnp.broadcast_to(y_glob, y.shape)], axis=1)
        y = relu(conv(y, w_g[i], b_g[i]))
        feats.append(y)
    xcat = jnp.concatenate(feats, axis=1)
    xo = conv(xcat, w_out, b_out)
    return {"global": jnp.max(xo, axis=-1), "per_point": xo}


if __name__ == "__main__":
    B, C_IN, N = 2, 3, 16          # batch, xyz channels, num points
    H_DIM, C_DIM, NUM_LAYERS = 32, 32, 4

    key = jax.random.PRNGKey(0)
    kx, kp = jax.random.split(key)
    x = jax.random.normal(kx, (B, C_IN, N), jnp.float32)   # NCL like PyTorch
    params = init_params(kp, c_in=C_IN, h_dim=H_DIM, c_dim=C_DIM,
                         num_layers=NUM_LAYERS)

    out = pointnet_encoder_forward(x, params, ret_perpoint_feat=True)
    out = jax.block_until_ready(out)

    ref = _reference_forward(x, params, NUM_LAYERS)
    assert out["global"].shape == (B, C_DIM)
    assert out["per_point"].shape == (B, C_DIM, N)
    assert jnp.allclose(out["global"], ref["global"], atol=1e-4, rtol=1e-4)
    assert jnp.allclose(out["per_point"], ref["per_point"], atol=1e-4, rtol=1e-4)

    print("KERNEL_OK")
</pallas_src>

<mosaic_0001>
module attributes {stable_mosaic.version = 11 : i64} {
  func.func @_pointnet_kernel(%arg0: i32, %arg1: memref<1x3x16xf32, #tpu.memory_space<vmem>>, %arg2: memref<32x3xf32, #tpu.memory_space<vmem>>, %arg3: memref<32x1xf32, #tpu.memory_space<vmem>>, %arg4: memref<4x32x32xf32, #tpu.memory_space<vmem>>, %arg5: memref<4x32x1xf32, #tpu.memory_space<vmem>>, %arg6: memref<4x32x32xf32, #tpu.memory_space<vmem>>, %arg7: memref<4x32x32xf32, #tpu.memory_space<vmem>>, %arg8: memref<4x32x1xf32, #tpu.memory_space<vmem>>, %arg9: memref<4x32x32xf32, #tpu.memory_space<vmem>>, %arg10: memref<32x1xf32, #tpu.memory_space<vmem>>, %arg11: memref<1x32x1xf32, #tpu.memory_space<vmem>>, %arg12: memref<1x32x16xf32, #tpu.memory_space<vmem>>) attributes {dimension_semantics = [#tpu.dimension_semantics<parallel>], iteration_bounds = array<i64: 2>, scalar_prefetch = 0 : i64, scratch_operands = 0 : i64, tpu.core_type = #tpu.core_type<tc>, window_params = [{transform_indices = @transform_0, window_bounds = array<i64: 1, 3, 16>}, {pipeline_mode = #tpu.pipeline_mode<synchronous>, transform_indices = @transform_1, window_bounds = array<i64: 32, 3>}, {pipeline_mode = #tpu.pipeline_mode<synchronous>, transform_indices = @transform_2, window_bounds = array<i64: 32, 1>}, {pipeline_mode = #tpu.pipeline_mode<synchronous>, transform_indices = @transform_3, window_bounds = array<i64: 4, 32, 32>}, {pipeline_mode = #tpu.pipeline_mode<synchronous>, transform_indices = @transform_4, window_bounds = array<i64: 4, 32, 1>}, {pipeline_mode = #tpu.pipeline_mode<synchronous>, transform_indices = @transform_5, window_bounds = array<i64: 4, 32, 32>}, {pipeline_mode = #tpu.pipeline_mode<synchronous>, transform_indices = @transform_6, window_bounds = array<i64: 4, 32, 32>}, {pipeline_mode = #tpu.pipeline_mode<synchronous>, transform_indices = @transform_7, window_bounds = array<i64: 4, 32, 1>}, {pipeline_mode = #tpu.pipeline_mode<synchronous>, transform_indices = @transform_8, window_bounds = array<i64: 4, 32, 32>}, {pipeline_mode = #tpu.pipeline_mode<synchronous>, transform_indices = @transform_9, window_bounds = array<i64: 32, 1>}, {transform_indices = @transform_10, window_bounds = array<i64: 1, 32, 1>}, {transform_indices = @transform_11, window_bounds = array<i64: 1, 32, 16>}]} {
    %c0 = arith.constant 0 : index
    %c0_0 = arith.constant 0 : index
    %c0_1 = arith.constant 0 : index
    %0 = vector.load %arg1[%c0, %c0_0, %c0_1] : memref<1x3x16xf32, #tpu.memory_space<vmem>>, vector<1x3x16xf32>
    %1 = vector.shape_cast %0 : vector<1x3x16xf32> to vector<3x16xf32>
    %c0_2 = arith.constant 0 : index
    %c0_3 = arith.constant 0 : index
    %2 = vector.load %arg2[%c0_2, %c0_3] : memref<32x3xf32, #tpu.memory_space<vmem>>, vector<32x3xf32>
    %cst = arith.constant dense<0.000000e+00> : vector<32x16xf32>
    %3 = tpu.matmul %2, %1, %cst {dimension_numbers = #tpu.dot_dimension_numbers<[1], [0], [0], [1], [0, 0, 1, 1], [], []>} : vector<32x3xf32>, vector<3x16xf32>, vector<32x16xf32> -> vector<32x16xf32>
    %c0_4 = arith.constant 0 : index
    %c0_5 = arith.constant 0 : index
    %4 = vector.load %arg3[%c0_4, %c0_5] : memref<32x1xf32, #tpu.memory_space<vmem>>, vector<32x1xf32>
    %5 = vector.broadcast %4 : vector<32x1xf32> to vector<32x16xf32>
    %6 = arith.addf %3, %5 : vector<32x16xf32>
    %cst_6 = arith.constant 0.000000e+00 : f32
    %7 = vector.broadcast %cst_6 : f32 to vector<32x16xf32>
    %8 = arith.maximumf %6, %7 : vector<32x16xf32>
    %c0_7 = arith.constant 0 : index
    %c0_8 = arith.constant 0 : index
    %c0_9 = arith.constant 0 : index
    %9 = vector.load %arg4[%c0_7, %c0_8, %c0_9] : memref<4x32x32xf32, #tpu.memory_space<vmem>>, vector<1x32x32xf32>
    %10 = vector.shape_cast %9 : vector<1x32x32xf32> to vector<32x32xf32>
    %cst_10 = arith.constant dense<0.000000e+00> : vector<32x16xf32>
    %11 = tpu.matmul %10, %8, %cst_10 {dimension_numbers = #tpu.dot_dimension_numbers<[1], [0], [0], [1], [0, 0, 1, 1], [], []>} : vector<32x32xf32>, vector<32x16xf32>, vector<32x16xf32> -> vector<32x16xf32>
    %c0_11 = arith.constant 0 : index
    %c0_12 = arith.constant 0 : index
    %c0_13 = arith.constant 0 : index
    %12 = vector.load %arg5[%c0_11, %c0_12, %c0_13] : memref<4x32x1xf32, #tpu.memory_space<vmem>>, vector<1x32x1xf32>
    %13 = vector.shape_cast %12 : vector<1x32x1xf32> to vector<32x1xf32>
    %14 = vector.broadcast %13 : vector<32x1xf32> to vector<32x16xf32>
    %15 = arith.addf %11, %14 : vector<32x16xf32>
    %cst_14 = arith.constant 0.000000e+00 : f32
    %16 = vector.broadcast %cst_14 : f32 to vector<32x16xf32>
    %17 = arith.maximumf %15, %16 : vector<32x16xf32>
    %cst_15 = arith.constant dense<0xFF800000> : vector<32xf32>
    %18 = vector.multi_reduction <maximumf>, %17, %cst_15 [1] : vector<32x16xf32> to vector<32xf32>
    %19 = vector.shape_cast %18 : vector<32xf32> to vector<32x1xf32>
    %c0_16 = arith.constant 0 : index
    %c0_17 = arith.constant 0 : index
    %c0_18 = arith.constant 0 : index
    %20 = vector.load %arg7[%c0_16, %c0_17, %c0_18] : memref<4x32x32xf32, #tpu.memory_space<vmem>>, vector<1x32x32xf32>
    %21 = vector.shape_cast %20 : vector<1x32x32xf32> to vector<32x32xf32>
    %cst_19 = arith.constant dense<0.000000e+00> : vector<32x1xf32>
    %22 = tpu.matmul %21, %19, %cst_19 {dimension_numbers = #tpu.dot_dimension_numbers<[1], [0], [0], [1], [0, 0, 1, 1], [], []>} : vector<32x32xf32>, vector<32x1xf32>, vector<32x1xf32> -> vector<32x1xf32>
    %c0_20 = arith.constant 0 : index
    %c0_21 = arith.constant 0 : index
    %c0_22 = arith.constant 0 : index
    %23 = vector.load %arg8[%c0_20, %c0_21, %c0_22] : memref<4x32x1xf32, #tpu.memory_space<vmem>>, vector<1x32x1xf32>
    %24 = vector.shape_cast %23 : vector<1x32x1xf32> to vector<32x1xf32>
    %25 = arith.addf %22, %24 : vector<32x1xf32>
    %c0_23 = arith.constant 0 : index
    %c0_24 = arith.constant 0 : index
    %c0_25 = arith.constant 0 : index
    %26 = vector.load %arg6[%c0_23, %c0_24, %c0_25] : memref<4x32x32xf32, #tpu.memory_space<vmem>>, vector<1x32x32xf32>
    %27 = vector.shape_cast %26 : vector<1x32x32xf32> to vector<32x32xf32>
    %cst_26 = arith.constant dense<0.000000e+00> : vector<32x16xf32>
    %28 = tpu.matmul %27, %17, %cst_26 {dimension_numbers = #tpu.dot_dimension_numbers<[1], [0], [0], [1], [0, 0, 1, 1], [], []>} : vector<32x32xf32>, vector<32x16xf32>, vector<32x16xf32> -> vector<32x16xf32>
    %29 = vector.broadcast %25 : vector<32x1xf32> to vector<32x16xf32>
    %30 = arith.addf %28, %29 : vector<32x16xf32>
    %cst_27 = arith.constant 0.000000e+00 : f32
    %31 = vector.broadcast %cst_27 : f32 to vector<32x16xf32>
    %32 = arith.maximumf %30, %31 : vector<32x16xf32>
    %c0_28 = arith.constant 0 : index
    %c0_29 = arith.constant 0 : index
    %c0_30 = arith.constant 0 : index
    %33 = vector.load %arg9[%c0_28, %c0_29, %c0_30] : memref<4x32x32xf32, #tpu.memory_space<vmem>>, vector<1x32x32xf32>
    %34 = vector.shape_cast %33 : vector<1x32x32xf32> to vector<32x32xf32>
    %cst_31 = arith.constant dense<0.000000e+00> : vector<32x16xf32>
    %35 = tpu.matmul %34, %32, %cst_31 {dimension_numbers = #tpu.dot_dimension_numbers<[1], [0], [0], [1], [0, 0, 1, 1], [], []>} : vector<32x32xf32>, vector<32x16xf32>, vector<32x16xf32> -> vector<32x16xf32>
    %c1 = arith.constant 1 : index
    %c0_32 = arith.constant 0 : index
    %c0_33 = arith.constant 0 : index
    %36 = vector.load %arg4[%c1, %c0_32, %c0_33] : memref<4x32x32xf32, #tpu.memory_space<vmem>>, vector<1x32x32xf32>
    %37 = vector.shape_cast %36 : vector<1x32x32xf32> to vector<32x32xf32>
    %cst_34 = arith.constant dense<0.000000e+00> : vector<32x16xf32>
    %38 = tpu.matmul %37, %32, %cst_34 {dimension_numbers = #tpu.dot_dimension_numbers<[1], [0], [0], [1], [0, 0, 1, 1], [], []>} : vector<32x32xf32>, vector<32x16xf32>, vector<32x16xf32> -> vector<32x16xf32>
    %c1_35 = arith.constant 1 : index
    %c0_36 = arith.constant 0 : index
    %c0_37 = arith.constant 0 : index
    %39 = vector.load %arg5[%c1_35, %c0_36, %c0_37] : memref<4x32x1xf32, #tpu.memory_space<vmem>>, vector<1x32x1xf32>
    %40 = vector.shape_cast %39 : vector<1x32x1xf32> to vector<32x1xf32>
    %41 = vector.broadcast %40 : vector<32x1xf32> to vector<32x16xf32>
    %42 = arith.addf %38, %41 : vector<32x16xf32>
    %cst_38 = arith.constant 0.000000e+00 : f32
    %43 = vector.broadcast %cst_38 : f32 to vector<32x16xf32>
    %44 = arith.maximumf %42, %43 : vector<32x16xf32>
    %cst_39 = arith.constant dense<0xFF800000> : vector<32xf32>
    %45 = vector.multi_reduction <maximumf>, %44, %cst_39 [1] : vector<32x16xf32> to vector<32xf32>
    %46 = vector.shape_cast %45 : vector<32xf32> to vector<32x1xf32>
    %c1_40 = arith.constant 1 : index
    %c0_41 = arith.constant 0 : index
    %c0_42 = arith.constant 0 : index
    %47 = vector.load %arg7[%c1_40, %c0_41, %c0_42] : memref<4x32x32xf32, #tpu.memory_space<vmem>>, vector<1x32x32xf32>
    %48 = vector.shape_cast %47 : vector<1x32x32xf32> to vector<32x32xf32>
    %cst_43 = arith.constant dense<0.000000e+00> : vector<32x1xf32>
    %49 = tpu.matmul %48, %46, %cst_43 {dimension_numbers = #tpu.dot_dimension_numbers<[1], [0], [0], [1], [0, 0, 1, 1], [], []>} : vector<32x32xf32>, vector<32x1xf32>, vector<32x1xf32> -> vector<32x1xf32>
    %c1_44 = arith.constant 1 : index
    %c0_45 = arith.constant 0 : index
    %c0_46 = arith.constant 0 : index
    %50 = vector.load %arg8[%c1_44, %c0_45, %c0_46] : memref<4x32x1xf32, #tpu.memory_space<vmem>>, vector<1x32x1xf32>
    %51 = vector.shape_cast %50 : vector<1x32x1xf32> to vector<32x1xf32>
    %52 = arith.addf %49, %51 : vector<32x1xf32>
    %c1_47 = arith.constant 1 : index
    %c0_48 = arith.constant 0 : index
    %c0_49 = arith.constant 0 : index
    %53 = vector.load %arg6[%c1_47, %c0_48, %c0_49] : memref<4x32x32xf32, #tpu.memory_space<vmem>>, vector<1x32x32xf32>
    %54 = vector.shape_cast %53 : vector<1x32x32xf32> to vector<32x32xf32>
    %cst_50 = arith.constant dense<0.000000e+00> : vector<32x16xf32>
    %55 = tpu.matmul %54, %44, %cst_50 {dimension_numbers = #tpu.dot_dimension_numbers<[1], [0], [0], [1], [0, 0, 1, 1], [], []>} : vector<32x32xf32>, vector<32x16xf32>, vector<32x16xf32> -> vector<32x16xf32>
    %56 = vector.broadcast %52 : vector<32x1xf32> to vector<32x16xf32>
    %57 = arith.addf %55, %56 : vector<32x16xf32>
    %cst_51 = arith.constant 0.000000e+00 : f32
    %58 = vector.broadcast %cst_51 : f32 to vector<32x16xf32>
    %59 = arith.maximumf %57, %58 : vector<32x16xf32>
    %c1_52 = arith.constant 1 : index
    %c0_53 = arith.constant 0 : index
    %c0_54 = arith.constant 0 : index
    %60 = vector.load %arg9[%c1_52, %c0_53, %c0_54] : memref<4x32x32xf32, #tpu.memory_space<vmem>>, vector<1x32x32xf32>
    %61 = vector.shape_cast %60 : vector<1x32x32xf32> to vector<32x32xf32>
    %cst_55 = arith.constant dense<0.000000e+00> : vector<32x16xf32>
    %62 = tpu.matmul %61, %59, %cst_55 {dimension_numbers = #tpu.dot_dimension_numbers<[1], [0], [0], [1], [0, 0, 1, 1], [], []>} : vector<32x32xf32>, vector<32x16xf32>, vector<32x16xf32> -> vector<32x16xf32>
    %63 = arith.addf %35, %62 : vector<32x16xf32>
    %c2 = arith.constant 2 : index
    %c0_56 = arith.constant 0 : index
    %c0_57 = arith.constant 0 : index
    %64 = vector.load %arg4[%c2, %c0_56, %c0_57] : memref<4x32x32xf32, #tpu.memory_space<vmem>>, vector<1x32x32xf32>
    %65 = vector.shape_cast %64 : vector<1x32x32xf32> to vector<32x32xf32>
    %cst_58 = arith.constant dense<0.000000e+00> : vector<32x16xf32>
    %66 = tpu.matmul %65, %59, %cst_58 {dimension_numbers = #tpu.dot_dimension_numbers<[1], [0], [0], [1], [0, 0, 1, 1], [], []>} : vector<32x32xf32>, vector<32x16xf32>, vector<32x16xf32> -> vector<32x16xf32>
    %c2_59 = arith.constant 2 : index
    %c0_60 = arith.constant 0 : index
    %c0_61 = arith.constant 0 : index
    %67 = vector.load %arg5[%c2_59, %c0_60, %c0_61] : memref<4x32x1xf32, #tpu.memory_space<vmem>>, vector<1x32x1xf32>
    %68 = vector.shape_cast %67 : vector<1x32x1xf32> to vector<32x1xf32>
    %69 = vector.broadcast %68 : vector<32x1xf32> to vector<32x16xf32>
    %70 = arith.addf %66, %69 : vector<32x16xf32>
    %cst_62 = arith.constant 0.000000e+00 : f32
    %71 = vector.broadcast %cst_62 : f32 to vector<32x16xf32>
    %72 = arith.maximumf %70, %71 : vector<32x16xf32>
    %cst_63 = arith.constant dense<0xFF800000> : vector<32xf32>
    %73 = vector.multi_reduction <maximumf>, %72, %cst_63 [1] : vector<32x16xf32> to vector<32xf32>
    %74 = vector.shape_cast %73 : vector<32xf32> to vector<32x1xf32>
    %c2_64 = arith.constant 2 : index
    %c0_65 = arith.constant 0 : index
    %c0_66 = arith.constant 0 : index
    %75 = vector.load %arg7[%c2_64, %c0_65, %c0_66] : memref<4x32x32xf32, #tpu.memory_space<vmem>>, vector<1x32x32xf32>
    %76 = vector.shape_cast %75 : vector<1x32x32xf32> to vector<32x32xf32>
    %cst_67 = arith.constant dense<0.000000e+00> : vector<32x1xf32>
    %77 = tpu.matmul %76, %74, %cst_67 {dimension_numbers = #tpu.dot_dimension_numbers<[1], [0], [0], [1], [0, 0, 1, 1], [], []>} : vector<32x32xf32>, vector<32x1xf32>, vector<32x1xf32> -> vector<32x1xf32>
    %c2_68 = arith.constant 2 : index
    %c0_69 = arith.constant 0 : index
    %c0_70 = arith.constant 0 : index
    %78 = vector.load %arg8[%c2_68, %c0_69, %c0_70] : memref<4x32x1xf32, #tpu.memory_space<vmem>>, vector<1x32x1xf32>
    %79 = vector.shape_cast %78 : vector<1x32x1xf32> to vector<32x1xf32>
    %80 = arith.addf %77, %79 : vector<32x1xf32>
    %c2_71 = arith.constant 2 : index
    %c0_72 = arith.constant 0 : index
    %c0_73 = arith.constant 0 : index
    %81 = vector.load %arg6[%c2_71, %c0_72, %c0_73] : memref<4x32x32xf32, #tpu.memory_space<vmem>>, vector<1x32x32xf32>
    %82 = vector.shape_cast %81 : vector<1x32x32xf32> to vector<32x32xf32>
    %cst_74 = arith.constant dense<0.000000e+00> : vector<32x16xf32>
    %83 = tpu.matmul %82, %72, %cst_74 {dimension_numbers = #tpu.dot_dimension_numbers<[1], [0], [0], [1], [0, 0, 1, 1], [], []>} : vector<32x32xf32>, vector<32x16xf32>, vector<32x16xf32> -> vector<32x16xf32>
    %84 = vector.broadcast %80 : vector<32x1xf32> to vector<32x16xf32>
    %85 = arith.addf %83, %84 : vector<32x16xf32>
    %cst_75 = arith.constant 0.000000e+00 : f32
    %86 = vector.broadcast %cst_75 : f32 to vector<32x16xf32>
    %87 = arith.maximumf %85, %86 : vector<32x16xf32>
    %c2_76 = arith.constant 2 : index
    %c0_77 = arith.constant 0 : index
    %c0_78 = arith.constant 0 : index
    %88 = vector.load %arg9[%c2_76, %c0_77, %c0_78] : memref<4x32x32xf32, #tpu.memory_space<vmem>>, vector<1x32x32xf32>
    %89 = vector.shape_cast %88 : vector<1x32x32xf32> to vector<32x32xf32>
    %cst_79 = arith.constant dense<0.000000e+00> : vector<32x16xf32>
    %90 = tpu.matmul %89, %87, %cst_79 {dimension_numbers = #tpu.dot_dimension_numbers<[1], [0], [0], [1], [0, 0, 1, 1], [], []>} : vector<32x32xf32>, vector<32x16xf32>, vector<32x16xf32> -> vector<32x16xf32>
    %91 = arith.addf %63, %90 : vector<32x16xf32>
    %c3 = arith.constant 3 : index
    %c0_80 = arith.constant 0 : index
    %c0_81 = arith.constant 0 : index
    %92 = vector.load %arg4[%c3, %c0_80, %c0_81] : memref<4x32x32xf32, #tpu.memory_space<vmem>>, vector<1x32x32xf32>
    %93 = vector.shape_cast %92 : vector<1x32x32xf32> to vector<32x32xf32>
    %cst_82 = arith.constant dense<0.000000e+00> : vector<32x16xf32>
    %94 = tpu.matmul %93, %87, %cst_82 {dimension_numbers = #tpu.dot_dimension_numbers<[1], [0], [0], [1], [0, 0, 1, 1], [], []>} : vector<32x32xf32>, vector<32x16xf32>, vector<32x16xf32> -> vector<32x16xf32>
    %c3_83 = arith.constant 3 : index
    %c0_84 = arith.constant 0 : index
    %c0_85 = arith.constant 0 : index
    %95 = vector.load %arg5[%c3_83, %c0_84, %c0_85] : memref<4x32x1xf32, #tpu.memory_space<vmem>>, vector<1x32x1xf32>
    %96 = vector.shape_cast %95 : vector<1x32x1xf32> to vector<32x1xf32>
    %97 = vector.broadcast %96 : vector<32x1xf32> to vector<32x16xf32>
    %98 = arith.addf %94, %97 : vector<32x16xf32>
    %cst_86 = arith.constant 0.000000e+00 : f32
    %99 = vector.broadcast %cst_86 : f32 to vector<32x16xf32>
    %100 = arith.maximumf %98, %99 : vector<32x16xf32>
    %cst_87 = arith.constant dense<0xFF800000> : vector<32xf32>
    %101 = vector.multi_reduction <maximumf>, %100, %cst_87 [1] : vector<32x16xf32> to vector<32xf32>
    %102 = vector.shape_cast %101 : vector<32xf32> to vector<32x1xf32>
    %c3_88 = arith.constant 3 : index
    %c0_89 = arith.constant 0 : index
    %c0_90 = arith.constant 0 : index
    %103 = vector.load %arg7[%c3_88, %c0_89, %c0_90] : memref<4x32x32xf32, #tpu.memory_space<vmem>>, vector<1x32x32xf32>
    %104 = vector.shape_cast %103 : vector<1x32x32xf32> to vector<32x32xf32>
    %cst_91 = arith.constant dense<0.000000e+00> : vector<32x1xf32>
    %105 = tpu.matmul %104, %102, %cst_91 {dimension_numbers = #tpu.dot_dimension_numbers<[1], [0], [0], [1], [0, 0, 1, 1], [], []>} : vector<32x32xf32>, vector<32x1xf32>, vector<32x1xf32> -> vector<32x1xf32>
    %c3_92 = arith.constant 3 : index
    %c0_93 = arith.constant 0 : index
    %c0_94 = arith.constant 0 : index
    %106 = vector.load %arg8[%c3_92, %c0_93, %c0_94] : memref<4x32x1xf32, #tpu.memory_space<vmem>>, vector<1x32x1xf32>
    %107 = vector.shape_cast %106 : vector<1x32x1xf32> to vector<32x1xf32>
    %108 = arith.addf %105, %107 : vector<32x1xf32>
    %c3_95 = arith.constant 3 : index
    %c0_96 = arith.constant 0 : index
    %c0_97 = arith.constant 0 : index
    %109 = vector.load %arg6[%c3_95, %c0_96, %c0_97] : memref<4x32x32xf32, #tpu.memory_space<vmem>>, vector<1x32x32xf32>
    %110 = vector.shape_cast %109 : vector<1x32x32xf32> to vector<32x32xf32>
    %cst_98 = arith.constant dense<0.000000e+00> : vector<32x16xf32>
    %111 = tpu.matmul %110, %100, %cst_98 {dimension_numbers = #tpu.dot_dimension_numbers<[1], [0], [0], [1], [0, 0, 1, 1], [], []>} : vector<32x32xf32>, vector<32x16xf32>, vector<32x16xf32> -> vector<32x16xf32>
    %112 = vector.broadcast %108 : vector<32x1xf32> to vector<32x16xf32>
    %113 = arith.addf %111, %112 : vector<32x16xf32>
    %cst_99 = arith.constant 0.000000e+00 : f32
    %114 = vector.broadcast %cst_99 : f32 to vector<32x16xf32>
    %115 = arith.maximumf %113, %114 : vector<32x16xf32>
    %c3_100 = arith.constant 3 : index
    %c0_101 = arith.constant 0 : index
    %c0_102 = arith.constant 0 : index
    %116 = vector.load %arg9[%c3_100, %c0_101, %c0_102] : memref<4x32x32xf32, #tpu.memory_space<vmem>>, vector<1x32x32xf32>
    %117 = vector.shape_cast %116 : vector<1x32x32xf32> to vector<32x32xf32>
    %cst_103 = arith.constant dense<0.000000e+00> : vector<32x16xf32>
    %118 = tpu.matmul %117, %115, %cst_103 {dimension_numbers = #tpu.dot_dimension_numbers<[1], [0], [0], [1], [0, 0, 1, 1], [], []>} : vector<32x32xf32>, vector<32x16xf32>, vector<32x16xf32> -> vector<32x16xf32>
    %119 = arith.addf %91, %118 : vector<32x16xf32>
    %c0_104 = arith.constant 0 : index
    %c0_105 = arith.constant 0 : index
    %120 = vector.load %arg10[%c0_104, %c0_105] : memref<32x1xf32, #tpu.memory_space<vmem>>, vector<32x1xf32>
    %121 = vector.broadcast %120 : vector<32x1xf32> to vector<32x16xf32>
    %122 = arith.addf %119, %121 : vector<32x16xf32>
    %c0_106 = arith.constant 0 : index
    %c0_107 = arith.constant 0 : index
    %c0_108 = arith.constant 0 : index
    %123 = vector.load %arg12[%c0_106, %c0_107, %c0_108] : memref<1x32x16xf32, #tpu.memory_space<vmem>>, vector<1x32x16xf32>
    %124 = vector.shape_cast %123 : vector<1x32x16xf32> to vector<32x16xf32>
    %125 = vector.shape_cast %122 : vector<32x16xf32> to vector<1x32x16xf32>
    tpu.vector_store %arg12[%c0_106, %c0_107, %c0_108], %125 {strides = array<i32>} : memref<1x32x16xf32, #tpu.memory_space<vmem>>, vector<1x32x16xf32>,
    %cst_109 = arith.constant dense<0xFF800000> : vector<32xf32>
    %126 = vector.multi_reduction <maximumf>, %122, %cst_109 [1] : vector<32x16xf32> to vector<32xf32>
    %127 = vector.shape_cast %126 : vector<32xf32> to vector<32x1xf32>
    %c0_110 = arith.constant 0 : index
    %c0_111 = arith.constant 0 : index
    %c0_112 = arith.constant 0 : index
    %128 = vector.load %arg11[%c0_110, %c0_111, %c0_112] : memref<1x32x1xf32, #tpu.memory_space<vmem>>, vector<1x32x1xf32>
    %129 = vector.shape_cast %128 : vector<1x32x1xf32> to vector<32x1xf32>
    %130 = vector.shape_cast %127 : vector<32x1xf32> to vector<1x32x1xf32>
    tpu.vector_store %arg11[%c0_110, %c0_111, %c0_112], %130 {strides = array<i32>} : memref<1x32x1xf32, #tpu.memory_space<vmem>>, vector<1x32x1xf32>,
    return
  }
  func.func @transform_0(%arg0: i32) -> (i32, i32, i32) {
    %c0_i32 = arith.constant 0 : i32
    %c0_i32_0 = arith.constant 0 : i32
    %c0_i32_1 = arith.constant 0 : i32
    return %arg0, %c0_i32, %c0_i32_0 : i32, i32, i32
  }
  func.func @transform_1(%arg0: i32) -> (i32, i32) {
    %c0_i32 = arith.constant 0 : i32
    %c0_i32_0 = arith.constant 0 : i32
    %c0_i32_1 = arith.constant 0 : i32
    return %c0_i32, %c0_i32_0 : i32, i32
  }
  func.func @transform_2(%arg0: i32) -> (i32, i32) {
    %c0_i32 = arith.constant 0 : i32
    %c0_i32_0 = arith.constant 0 : i32
    %c0_i32_1 = arith.constant 0 : i32
    return %c0_i32, %c0_i32_0 : i32, i32
  }
  func.func @transform_3(%arg0: i32) -> (i32, i32, i32) {
    %c0_i32 = arith.constant 0 : i32
    %c0_i32_0 = arith.constant 0 : i32
    %c0_i32_1 = arith.constant 0 : i32
    %c0_i32_2 = arith.constant 0 : i32
    return %c0_i32, %c0_i32_0, %c0_i32_1 : i32, i32, i32
  }
  func.func @transform_4(%arg0: i32) -> (i32, i32, i32) {
    %c0_i32 = arith.constant 0 : i32
    %c0_i32_0 = arith.constant 0 : i32
    %c0_i32_1 = arith.constant 0 : i32
    %c0_i32_2 = arith.constant 0 : i32
    return %c0_i32, %c0_i32_0, %c0_i32_1 : i32, i32, i32
  }
  func.func @transform_5(%arg0: i32) -> (i32, i32, i32) {
    %c0_i32 = arith.constant 0 : i32
    %c0_i32_0 = arith.constant 0 : i32
    %c0_i32_1 = arith.constant 0 : i32
    %c0_i32_2 = arith.constant 0 : i32
    return %c0_i32, %c0_i32_0, %c0_i32_1 : i32, i32, i32
  }
  func.func @transform_6(%arg0: i32) -> (i32, i32, i32) {
    %c0_i32 = arith.constant 0 : i32
    %c0_i32_0 = arith.constant 0 : i32
    %c0_i32_1 = arith.constant 0 : i32
    %c0_i32_2 = arith.constant 0 : i32
    return %c0_i32, %c0_i32_0, %c0_i32_1 : i32, i32, i32
  }
  func.func @transform_7(%arg0: i32) -> (i32, i32, i32) {
    %c0_i32 = arith.constant 0 : i32
    %c0_i32_0 = arith.constant 0 : i32
    %c0_i32_1 = arith.constant 0 : i32
    %c0_i32_2 = arith.constant 0 : i32
    return %c0_i32, %c0_i32_0, %c0_i32_1 : i32, i32, i32
  }
  func.func @transform_8(%arg0: i32) -> (i32, i32, i32) {
    %c0_i32 = arith.constant 0 : i32
    %c0_i32_0 = arith.constant 0 : i32
    %c0_i32_1 = arith.constant 0 : i32
    %c0_i32_2 = arith.constant 0 : i32
    return %c0_i32, %c0_i32_0, %c0_i32_1 : i32, i32, i32
  }
  func.func @transform_9(%arg0: i32) -> (i32, i32) {
    %c0_i32 = arith.constant 0 : i32
    %c0_i32_0 = arith.constant 0 : i32
    %c0_i32_1 = arith.constant 0 : i32
    return %c0_i32, %c0_i32_0 : i32, i32
  }
  func.func @transform_10(%arg0: i32) -> (i32, i32, i32) {
    %c0_i32 = arith.constant 0 : i32
    %c0_i32_0 = arith.constant 0 : i32
    %c0_i32_1 = arith.constant 0 : i32
    return %arg0, %c0_i32, %c0_i32_0 : i32, i32, i32
  }
  func.func @transform_11(%arg0: i32) -> (i32, i32, i32) {
    %c0_i32 = arith.constant 0 : i32
    %c0_i32_0 = arith.constant 0 : i32
    %c0_i32_1 = arith.constant 0 : i32
    return %arg0, %c0_i32, %c0_i32_0 : i32, i32, i32
  }
}

</mosaic_0001>

<bundles_post_ra>
// kernel: tpu_custom_call.1
= control target key start
LH: loop header
LB: loop body
LE: loop exit
PB: predicated region body
PF: predicated region fallthrough
CT: control target
= control target key end

     0   :  { %17 = vsyncpa [#allocation3], 0  ;;  %s2382_s0 = inlined_call_operand.vmem [shape: f32[2,3,16], index: 0, kind: input, shape index: {}]   ;;  %s2383_s1 = inlined_call_operand.vmem [shape: f32[32,3], index: 1, kind: input, shape index: {}]   ;;  %s2384_s2 = inlined_call_operand.vmem [shape: f32[32,1], index: 2, kind: input, shape index: {}]   ;;  %s2385_s3 = inlined_call_operand.vmem [shape: f32[4,32,32], index: 3, kind: input, shape index: {}]   ;;  %s2386_s4 = inlined_call_operand.vmem [shape: f32[4,32,1], index: 4, kind: input, shape index: {}]   ;;  %s2387_s5 = inlined_call_operand.vmem [shape: f32[4,32,32], index: 5, kind: input, shape index: {}]   ;;  %s2388_s6 = inlined_call_operand.hbm [shape: f32[4,32,32], index: 6, kind: input, shape index: {}]   ;;  %s2389_s7 = inlined_call_operand.vmem [shape: f32[4,32,1], index: 7, kind: input, shape index: {}]   ;;  %s2390_s8 = inlined_call_operand.hbm [shape: f32[4,32,32], index: 8, kind: input, shape index: {}]   ;;  %s2391_s9 = inlined_call_operand.vmem [shape: f32[32,1], index: 9, kind: input, shape index: {}]   ;;  %s2392_s10 = inlined_call_operand.vmem [shape: f32[2,32,1], index: 10, kind: output, shape index: {0}]   ;;  %s2393_s11 = inlined_call_operand.vmem [shape: f32[2,32,16], index: 11, kind: output, shape index: {1}]  }
   0x1   :  { %18 = vsyncpa [#allocation5], 0  ;;  %s2003_s17 = smov 0  }
   0x2 LB: > { %s322_s20 = sshll.u32 %s2388_s6, 4  ;;  %s1689_s21 = sadd.s32 4294967295, %s1936_s17   ;;  %s1936_s17 = sphi %s2003_s17, %s24_s17   ;;  %s323_s20 = int_to_ptr.hbm [resolvable:$true] %s322_s20 }
   0x3   : > { %p1691_p0 = scmp.ge.s32.totalorder %s1936_s17, 1  ;;  %p296_p1 = scmp.lt.s32.totalorder %s1936_s17, 3 }
   0x4   : > { %p1842_p2 = scmp.eq.s32.totalorder %s1689_s21, 0  ;;  %s1938_s23 = smov [#allocation2]  }
   0x5   : > { %p2014_p3 = pnand %p1691_p0, %p296_p1  ;;  %s324_s24 = sshll.u32 %s1938_s23, 4  ;;  %s325_s24 = int_to_ptr.vmem [resolvable:$true] %s324_s24 }
   0x6   : > { %s339_s27 = sshll.u32 %s2390_s8, 4  ;;  %s1939_s28 = smov [#allocation4]   ;;  %s340_s27 = int_to_ptr.hbm [resolvable:$true] %s339_s27 }
   0x7   : > { %p1835_p4 = pneg %p2014_p3  ;;  %s341_s29 = sshll.u32 %s1939_s28, 4  ;;  %s342_s29 = int_to_ptr.vmem [resolvable:$true] %s341_s29 }
   0x8   : > { %s1940_s30 = smov 128   ;;  %s1941_s12 = smov 8  }
   0x9   : > { %p1836_p5 = pnand %p1842_p2, %p1835_p4  ;;  %367 = sbr.rel (%p2014_p3) target bundleno = 2687 (0xa7f), region = 60 }
   0xb   : > { %1838 = dma.hbm_to_vmem [thread:$0]  (!%p1836_p5), %s323_s20, 2048, %s325_s24, [#allocation3], %s1940_s30, %s1940_s30, %s1941_s12  }
   0xc   : > { %1841 = dma.hbm_to_vmem [thread:$0]  (!%p1836_p5), %s340_s27, 2048, %s342_s29, [#allocation5], %s1940_s30, %s1940_s30, %s1941_s12  }
   0xe   : > { %1927 = dma.done.wait (%p1842_p2), [#allocation3], 2048  }
   0xf   : > { %1929 = vsyncadd (%p1842_p2), [#allocation3], 4294965248 }
  0x10   : > { %1931 = dma.done.wait (%p1842_p2), [#allocation5], 2048  }
  0x11   : > { %1933 = vsyncadd (%p1842_p2), [#allocation5], 4294965248  ;;  %p417_p6 = scmp.lt.s32.totalorder %s1689_s21, 1  ;;  %v1942_v0 = vmov 0   ;;  %vm473_vm0 = vcmask 1042432   ;;  %v439_v1 = vld [vmem:[%s2384_s2 + $0x18] sm:$0xff] }
  0x12   : > { %1860 = vset.pattern.permute.xlu1 %v1942_v0  ;;  %1859 = vset.pattern.permute.xlu0 %v1942_v0  ;;  %v437_v2 = vld [vmem:[%s2384_s2 + $0x8] sm:$0xff]  ;;  %vm460_vm1 = vcmask 23552   ;;  %v434_v4 = vld [vmem:[%s2383_s1 + $0x10] sm:$0xff]  ;;  %v435_v5 = vld [vmem:[%s2383_s1 + $0x18] sm:$0xff]  ;;  %vm538_vm2 = vcmask 261120   ;;  %vm584_vm3 = vcmask 130048  }
  0x13   : > { %s2396_s21 = smov (!%p417_p6, %s1689_s21), 1  ;;  %1861 = vset.pattern.permute.xlu2 %v1942_v0  ;;  %457 = vperm.xlu0 %1859, %v439_v1   ;;  %v432_v6 = vld [vmem:[%s2383_s1] sm:$0xff]  ;;  %v433_v7 = vld [vmem:[%s2383_s1 + $0x8] sm:$0xff]  ;;  %v438_v8 = vld [vmem:[%s2384_s2 + $0x10] sm:$0xff]  ;;  %vm1574_vm4 = vcmask 7168  }
  0x14   : > { %s1698_s13 = sshll.u32 %s2396_s21, 2  ;;  %447 = vperm.xlu1 %1860, %v437_v2   ;;  %v436_v9 = vld [vmem:[%s2384_s2] sm:$0xff]  ;;  %v515_v10 = vld [vmem:[%s2386_s4 + $0x8] sm:$0xff]  ;;  %v517_v24 = vld [vmem:[%s2386_s4 + $0x18] sm:$0xff] }
  0x15   : > { %s420_s16 = scalar_lea.vmem %s2382_s0, %s1698_s13  ;;  %v514_v11 = vld [vmem:[%s2386_s4] sm:$0xff]  ;;  %535 = vperm.xlu2 %1861, %v517_v24   ;;  %v516_v30 = vld [vmem:[%s2386_s4 + $0x10] sm:$0xff]  ;;  %v511_v31 = vld [vmem:[%s2385_s3 + $0x8] sm:$0xff] }
  0x16   : > { %v431_v3 = vld [vmem:[%s420_s16] sm:$0x7]  ;;  %v512_v32 = vld [vmem:[%s2385_s3 + $0x10] sm:$0xff]  ;;  %v513_v33 = vld [vmem:[%s2385_s3 + $0x18] sm:$0xff]  ;;  %s1822_s16 = sshll.u32 %s2396_s21, 5 }
  0x17   : > { %1825 = vmatpush.msk.msra.mxu2 %vm473_vm0, %v431_v3  ;;  %1826 = vmatpush.msk.msra.mxu3 %vm473_vm0, %v431_v3  ;;  %v510_v29 = vld [vmem:[%s2385_s3] sm:$0xff]  ;;  %v647_v60 = vld [vmem:[%s2387_s5 + $0x8] sm:$0xff]  ;;  %v648_v62 = vld [vmem:[%s2387_s5 + $0x10] sm:$0xff]  ;;  %s430_s20 = scalar_lea.vmem %s2393_s11, %s1822_s16  ;;  %s425_s24 = scalar_lea.vmem %s2392_s10, %s1822_s16 }
  0x18   : > { %1706 = vmatmul.msk.f32.vlgmr.msra.gmra.mxu2 %vm460_vm1, %v434_v4  ;;  %1707 = vmatmul.msk.f32.vlgmr.msra.gmra.mxu3 %vm460_vm1, %v435_v5  ;;  %v646_v56 = vld [vmem:[%s2387_s5] sm:$0xff]  ;;  %v598_v61 = vld [vmem:[#allocation2 + $0x8] sm:$0xff]  ;;  %v599_v63 = vld [vmem:[#allocation2 + $0x10] sm:$0xff] }
  0x19   : > { %1703 = vmatpush.msk.msra.mxu0 %vm473_vm0, %v431_v3  ;;  %1824 = vmatpush.msk.msra.mxu1 %vm473_vm0, %v431_v3  ;;  %v597_v58 = vld [vmem:[#allocation2] sm:$0xff]  ;;  %v649_v0 = vld [vmem:[%s2387_s5 + $0x18] sm:$0xff]  ;;  %v602_v3 = vld [vmem:[%s2389_s7 + $0x8] sm:$0xff] }
  0x1a   : > { %1704 = vmatmul.msk.f32.vlgmr.msra.gmra.mxu0 %vm460_vm1, %v432_v6  ;;  %1705 = vmatmul.msk.f32.vlgmr.msra.gmra.mxu1 %vm460_vm1, %v433_v7  ;;  %v600_v1 = vld [vmem:[#allocation2 + $0x18] sm:$0xff]  ;;  %v603_v6 = vld [vmem:[%s2389_s7 + $0x10] sm:$0xff] }
  0x1b   : > { %452 = vperm.xlu0 %1859, %v438_v8   ;;  %v1726_v8 = vld [vmem:[%s2386_s4 + $0x30] sm:$0xff] }
  0x1c   : > { %442 = vperm.xlu1 %1860, %v436_v9  }
  0x1d   : > { %530 = vperm.xlu2 %1861, %v516_v30  }
  0x23   : > { %525 = vperm.xlu0 %1859, %v515_v10   ;;  %v601_v10 = vld [vmem:[%s2389_s7] sm:$0xff] }
  0x24   : > { %520 = vperm.xlu1 %1860, %v514_v11   ;;  %v604_v11 = vld [vmem:[%s2389_s7 + $0x18] sm:$0xff] }
  0x6f   : > { %v536_v35 = vpop.permute.xlu2 %535 }
  0x77   : > { %v531_v41 = vpop.permute.xlu2 %530 }
  0x85   : > { %v458_v12 = vpop.permute.xlu0 %457 }
  0x86   : > { %v448_v13 = vpop.permute.xlu1 %447 }
  0x8d   : > { %v453_v14 = vpop.permute.xlu0 %452 }
  0x8e   : > { %v443_v23 = vpop.permute.xlu1 %442 }
  0x95   : > { %v526_v36 = vpop.permute.xlu0 %525 }
  0x96   : > { %v521_v49 = vpop.permute.xlu1 %520 }
  0x97   : > { %v497_v15 = vpop.f32.mrf.mxu1  ;;  %v494_v20 = vpop.f32.mrf.mxu0 }
  0x98   : > { %v498_v21 = vadd.f32 %v497_v15, %v448_v13  ;;  %v495_v25 = vadd.f32 %v494_v20, %v443_v23  ;;  %v1727_v15 = vld [vmem:[%s2386_s4 + $0x38] sm:$0xff] }
  0x9a   : > { %v507_v27 = vmax.f32 %v498_v21, 0.0  ;;  %v506_v28 = vmax.f32 %v495_v25, 0.0 }
  0x9b   : > { %v500_v16 = vpop.f32.mrf.mxu2  ;;  %v503_v17 = vpop.f32.mrf.mxu3 }
  0x9c   : > { %v501_v18 = vadd.f32 %v500_v16, %v453_v14  ;;  %v504_v19 = vadd.f32 %v503_v17, %v458_v12  ;;  %v1725_v16 = vld [vmem:[%s2386_s4 + $0x28] sm:$0xff]  ;;  %v1724_v17 = vld [vmem:[%s2386_s4 + $0x20] sm:$0xff] }
  0x9e   : > { %v509_v22 = vmax.f32 %v504_v19, 0.0  ;;  %v508_v26 = vmax.f32 %v501_v18, 0.0 }
  0xa0   : > { %563 = vmatpush.msrb.mxu1 %v509_v22 }
  0xa2   : > { %564 = vmatpush.msrb.mxu1 %v508_v26 }
  0xa4   : > { %565 = vmatpush.msrb.mxu1 %v507_v27 }
  0xa6   : > { %566 = vmatpush.msrb.mxu1 %v506_v28 }
  0xa7   : > { %1708 = vmatmul.msk.f32.vlgmr.msrb.gmra.mxu1 %vm538_vm2, %v510_v29 }
  0xaf   : > { %1709 = vmatmul.msk.f32.gmra.mxu1 %vm538_vm2, %v511_v31 }
  0xb7   : > { %1710 = vmatmul.msk.f32.gmra.mxu1 %vm538_vm2, %v512_v32 }
  0xbf   : > { %1711 = vmatmul.msk.f32.gmra.mxu1 %vm538_vm2, %v513_v33 }
 0x124   : > { %v568_v34 = vpop.f32.mrf.mxu1 }
 0x125   : > { %v569_v50 = vadd.f32 %v568_v34, %v521_v49  ;;  %v1720_v34 = vld [vmem:[%s2385_s3 + $0x20] sm:$0xff] }
 0x127   : > { %v580_v52 = vmax.f32 %v569_v50, 0.0 }
 0x129   : > { %v585_v53 = vsel %vm584_vm3, %v580_v52, -inf }
 0x12c   : > { %v571_v37 = vpop.f32.mrf.mxu1 }
 0x12d   : > { %v572_v38 = vadd.f32 %v571_v37, %v526_v36  ;;  %v1722_v36 = vld [vmem:[%s2385_s3 + $0x30] sm:$0xff]  ;;  %v1723_v37 = vld [vmem:[%s2385_s3 + $0x38] sm:$0xff] }
 0x12f   : > { %v581_v39 = vmax.f32 %v572_v38, 0.0 }
 0x131   : > { %v588_v40 = vsel %vm584_vm3, %v581_v39, -inf }
 0x132   : > { %589 = vmax.xlane.f32.xlu1 %v588_v40 }
 0x134   : > { %v574_v42 = vpop.f32.mrf.mxu1 }
 0x135   : > { %v575_v43 = vadd.f32 %v574_v42, %v531_v41 }
 0x137   : > { %v582_v44 = vmax.f32 %v575_v43, 0.0 }
 0x139   : > { %v591_v45 = vsel %vm584_vm3, %v582_v44, -inf }
 0x13a   : > { %592 = vmax.xlane.f32.xlu0 %v591_v45 }
 0x13c   : > { %v577_v46 = vpop.f32.mrf.mxu1 }
 0x13d   : > { %v578_v47 = vadd.f32 %v577_v46, %v536_v35  ;;  %v1721_v35 = vld [vmem:[%s2385_s3 + $0x28] sm:$0xff] }
 0x13f   : > { %v583_v48 = vmax.f32 %v578_v47, 0.0 }
 0x141   : > { %694 = vmatpush.msrb.mxu3 %v583_v48  ;;  %v594_v51 = vsel %vm584_vm3, %v583_v48, -inf }
 0x142   : > { %595 = vmax.xlane.f32.xlu2 %v594_v51 }
 0x143   : > { %695 = vmatpush.msrb.mxu3 %v582_v44 }
 0x145   : > { %696 = vmatpush.msrb.mxu3 %v581_v39 }
 0x147   : > { %697 = vmatpush.msrb.mxu3 %v580_v52 }
 0x148   : > { %1716 = vmatmul.msk.f32.vlgmr.msrb.gmra.mxu3 %vm538_vm2, %v646_v56 }
 0x14a   : > { %586 = vmax.xlane.f32.xlu2 %v585_v53 }
 0x150   : > { %1717 = vmatmul.msk.f32.gmra.mxu3 %vm538_vm2, %v647_v60  ;;  %v1740_v60 = vld [vmem:[%s2387_s5 + $0x20] sm:$0xff] }
 0x158   : > { %1718 = vmatmul.msk.f32.gmra.mxu3 %vm538_vm2, %v648_v62  ;;  %v807_v62 = vld [vmem:[#allocation2 + $0x20] sm:$0xff] }
 0x160   : > { %1719 = vmatmul.msk.f32.gmra.mxu3 %vm538_vm2, %v649_v0  ;;  %v1741_v0 = vld [vmem:[%s2387_s5 + $0x28] sm:$0xff] }
 0x1a5   : > { %v590_v57 = vpop.xlane.xlu1 %589 }
 0x1ad   : > { %v593_v55 = vpop.xlane.xlu0 %592 }
 0x1b5   : > { %v596_v54 = vpop.xlane.xlu2 %595 }
 0x1b6   : > { %629 = vmatpush.msrb.mxu2 %v596_v54 }
 0x1b8   : > { %630 = vmatpush.msrb.mxu2 %v593_v55 }
 0x1ba   : > { %631 = vmatpush.msrb.mxu2 %v590_v57 }
 0x1bd   : > { %v587_v59 = vpop.xlane.xlu2 %586 }
 0x1be   : > { %632 = vmatpush.msrb.mxu2 %v587_v59 }
 0x1bf   : > { %1712 = vmatmul.msk.f32.vlgmr.msrb.gmra.mxu2 %vm538_vm2, %v597_v58 }
 0x1c7   : > { %1713 = vmatmul.msk.f32.gmra.mxu2 %vm538_vm2, %v598_v61 }
 0x1cb   : > { %v699_v18 = vpop.f32.mrf.mxu3 }
 0x1cf   : > { %1714 = vmatmul.msk.f32.gmra.mxu2 %vm538_vm2, %v599_v63 }
 0x1d3   : > { %v702_v19 = vpop.f32.mrf.mxu3 }
 0x1d7   : > { %1715 = vmatmul.msk.f32.gmra.mxu2 %vm538_vm2, %v600_v1  ;;  %v808_v1 = vld [vmem:[#allocation2 + $0x28] sm:$0xff] }
 0x1db   : > { %v705_v20 = vpop.f32.mrf.mxu3 }
 0x1e3   : > { %v708_v21 = vpop.f32.mrf.mxu3 }
 0x242   : > { %v634_v2 = vpop.f32.mrf.mxu2 }
 0x243   : > { %v635_v13 = vadd.f32 %v634_v2, %v601_v10  ;;  %v1742_v2 = vld [vmem:[%s2387_s5 + $0x30] sm:$0xff] }
 0x244   : > { %v1734_v10 = vld [vmem:[%s2389_s7 + $0x30] sm:$0xff] }
 0x24a   : > { %v637_v4 = vpop.f32.mrf.mxu2 }
 0x24b   : > { %v638_v5 = vadd.f32 %v637_v4, %v602_v3  ;;  %v809_v3 = vld [vmem:[#allocation2 + $0x30] sm:$0xff]  ;;  %v810_v4 = vld [vmem:[#allocation2 + $0x38] sm:$0xff] }
 0x24d   : > { %657 = vperm.xlu1 %1860, %v638_v5   ;;  %v1743_v5 = vld [vmem:[%s2387_s5 + $0x38] sm:$0xff] }
 0x252   : > { %v640_v7 = vpop.f32.mrf.mxu2 }
 0x253   : > { %v641_v9 = vadd.f32 %v640_v7, %v603_v6  ;;  %v1733_v7 = vld [vmem:[%s2389_s7 + $0x28] sm:$0xff] }
 0x255   : > { %662 = vperm.xlu0 %1859, %v641_v9   ;;  %741 = vperm.xlu1 %1860, %v1726_v8  }
 0x25a   : > { %v643_v12 = vpop.f32.mrf.mxu2 }
 0x25b   : > { %v644_v14 = vadd.f32 %v643_v12, %v604_v11  ;;  %v1761_v12 = vld [vmem:[%s2386_s4 + $0x48] sm:$0xff] }
 0x25d   : > { %667 = vperm.xlu2 %1861, %v644_v14   ;;  %652 = vperm.xlu0 %1859, %v635_v13   ;;  %v1735_v14 = vld [vmem:[%s2389_s7 + $0x38] sm:$0xff] }
 0x265   : > { %746 = vperm.xlu2 %1861, %v1727_v15   ;;  %736 = vperm.xlu0 %1859, %v1725_v16   ;;  %v1763_v16 = vld [vmem:[%s2386_s4 + $0x58] sm:$0xff] }
 0x26d   : > { %731 = vperm.xlu2 %1861, %v1724_v17  }
 0x2b7   : > { %v668_v22 = vpop.permute.xlu2 %667 }
 0x2b8   : > { %v709_v23 = vadd.f32 %v708_v21, %v668_v22  ;;  %v1762_v21 = vld [vmem:[%s2386_s4 + $0x50] sm:$0xff] }
 0x2ba   : > { %v714_v24 = vmax.f32 %v709_v23, 0.0 }
 0x2bc   : > { %773 = vmatpush.msrb.mxu0 %v714_v24 }
 0x2bf   : > { %v658_v25 = vpop.permute.xlu1 %657  ;;  %v747_v47 = vpop.permute.xlu2 %746 }
 0x2c0   : > { %v703_v27 = vadd.f32 %v702_v19, %v658_v25  ;;  %v1760_v19 = vld [vmem:[%s2386_s4 + $0x40] sm:$0xff] }
 0x2c2   : > { %v712_v30 = vmax.f32 %v703_v27, 0.0 }
 0x2c7   : > { %v663_v26 = vpop.permute.xlu0 %662  ;;  %v742_v44 = vpop.permute.xlu1 %741 }
 0x2c8   : > { %v706_v28 = vadd.f32 %v705_v20, %v663_v26  ;;  %v732_v53 = vpop.permute.xlu2 %731 }
 0x2ca   : > { %v713_v29 = vmax.f32 %v706_v28, 0.0 }
 0x2cc   : > { %774 = vmatpush.msrb.mxu0 %v713_v29 }
 0x2ce   : > { %775 = vmatpush.msrb.mxu0 %v712_v30 }
 0x2cf   : > { %v653_v31 = vpop.permute.xlu0 %652 }
 0x2d0   : > { %v700_v32 = vadd.f32 %v699_v18, %v653_v31  ;;  %v1732_v18 = vld [vmem:[%s2389_s7 + $0x20] sm:$0xff] }
 0x2d2   : > { %v711_v33 = vmax.f32 %v700_v32, 0.0 }
 0x2d4   : > { %776 = vmatpush.msrb.mxu0 %v711_v33 }
 0x2d5   : > { %1728 = vmatmul.msk.f32.vlgmr.msrb.gmra.mxu0 %vm538_vm2, %v1720_v34 }
 0x2d6   : > { %997 = vmatpush.msra.mxu0 %v714_v24 }
 0x2d7   : > { %v737_v39 = vpop.permute.xlu0 %736 }
 0x2d8   : > { %998 = vmatpush.msra.mxu0 %v713_v29 }
 0x2da   : > { %999 = vmatpush.msra.mxu0 %v712_v30 }
 0x2dc   : > { %1000 = vmatpush.msra.mxu0 %v711_v33 }
 0x2dd   : > { %1729 = vmatmul.msk.f32.gmra.mxu0 %vm538_vm2, %v1721_v35 }
 0x2e5   : > { %1730 = vmatmul.msk.f32.gmra.mxu0 %vm538_vm2, %v1722_v36 }
 0x2ed   : > { %1731 = vmatmul.msk.f32.gmra.mxu0 %vm538_vm2, %v1723_v37 }
 0x352   : > { %v778_v38 = vpop.f32.mrf.mxu0 }
 0x353   : > { %v779_v54 = vadd.f32 %v778_v38, %v732_v53  ;;  %v1756_v38 = vld [vmem:[%s2385_s3 + $0x40] sm:$0xff] }
 0x355   : > { %v790_v56 = vmax.f32 %v779_v54, 0.0 }
 0x357   : > { %v794_v57 = vsel %vm584_vm3, %v790_v56, -inf }
 0x35a   : > { %v781_v40 = vpop.f32.mrf.mxu0 }
 0x35b   : > { %v782_v41 = vadd.f32 %v781_v40, %v737_v39  ;;  %v1757_v39 = vld [vmem:[%s2385_s3 + $0x48] sm:$0xff]  ;;  %v1758_v40 = vld [vmem:[%s2385_s3 + $0x50] sm:$0xff] }
 0x35d   : > { %v791_v42 = vmax.f32 %v782_v41, 0.0  ;;  %v1759_v41 = vld [vmem:[%s2385_s3 + $0x58] sm:$0xff] }
 0x35f   : > { %v797_v43 = vsel %vm584_vm3, %v791_v42, -inf }
 0x360   : > { %798 = vmax.xlane.f32.xlu2 %v797_v43 }
 0x362   : > { %v784_v45 = vpop.f32.mrf.mxu0 }
 0x363   : > { %v785_v46 = vadd.f32 %v784_v45, %v742_v44 }
 0x365   : > { %v792_v48 = vmax.f32 %v785_v46, 0.0 }
 0x367   : > { %v800_v49 = vsel %vm584_vm3, %v792_v48, -inf }
 0x368   : > { %801 = vmax.xlane.f32.xlu0 %v800_v49 }
 0x36a   : > { %v787_v50 = vpop.f32.mrf.mxu0 }
 0x36b   : > { %v788_v51 = vadd.f32 %v787_v50, %v747_v47 }
 0x36d   : > { %v793_v52 = vmax.f32 %v788_v51, 0.0 }
 0x36f   : > { %906 = vmatpush.msra.mxu2 %v793_v52  ;;  %v803_v55 = vsel %vm584_vm3, %v793_v52, -inf }
 0x370   : > { %804 = vmax.xlane.f32.xlu1 %v803_v55 }
 0x371   : > { %907 = vmatpush.msra.mxu2 %v792_v48 }
 0x373   : > { %908 = vmatpush.msra.mxu2 %v791_v42 }
 0x375   : > { %909 = vmatpush.msra.mxu2 %v790_v56 }
 0x376   : > { %1744 = vmatmul.msk.f32.vlgmr.msra.gmra.mxu2 %vm538_vm2, %v1740_v60 }
 0x378   : > { %795 = vmax.xlane.f32.xlu1 %v794_v57 }
 0x37e   : > { %1745 = vmatmul.msk.f32.gmra.mxu2 %vm538_vm2, %v1741_v0  ;;  %v928_v0 = vld [vmem:[#allocation4 + $0x20] sm:$0xff] }
 0x386   : > { %1746 = vmatmul.msk.f32.gmra.mxu2 %vm538_vm2, %v1742_v2 }
 0x38e   : > { %1747 = vmatmul.msk.f32.gmra.mxu2 %vm538_vm2, %v1743_v5  ;;  %v929_v5 = vld [vmem:[#allocation4 + $0x28] sm:$0xff] }
 0x3d3   : > { %v799_v61 = vpop.xlane.xlu2 %798 }
 0x3db   : > { %v802_v59 = vpop.xlane.xlu0 %801 }
 0x3e3   : > { %v805_v58 = vpop.xlane.xlu1 %804 }
 0x3e4   : > { %840 = vmatpush.msra.mxu1 %v805_v58 }
 0x3e6   : > { %841 = vmatpush.msra.mxu1 %v802_v59 }
 0x3e8   : > { %842 = vmatpush.msra.mxu1 %v799_v61 }
 0x3eb   : > { %v796_v63 = vpop.xlane.xlu1 %795 }
 0x3ec   : > { %843 = vmatpush.msra.mxu1 %v796_v63 }
 0x3ed   : > { %1736 = vmatmul.msk.f32.vlgmr.msra.gmra.mxu1 %vm538_vm2, %v807_v62 }
 0x3f5   : > { %1737 = vmatmul.msk.f32.gmra.mxu1 %vm538_vm2, %v808_v1  ;;  %v715_v1 = vld [vmem:[#allocation4] sm:$0xff] }
 0x3f6   : > { %1752 = vmatmul.msk.f32.vlgmr.msra.gmra.mxu0 %vm538_vm2, %v715_v1 }
 0x3f9   : > { %v911_v22 = vpop.f32.mrf.mxu2 }
 0x3fd   : > { %1738 = vmatmul.msk.f32.gmra.mxu1 %vm538_vm2, %v809_v3  ;;  %v1102_v3 = vld [vmem:[#allocation2 + $0x40] sm:$0xff] }
 0x401   : > { %v914_v23 = vpop.f32.mrf.mxu2 }
 0x405   : > { %1739 = vmatmul.msk.f32.gmra.mxu1 %vm538_vm2, %v810_v4 }
 0x409   : > { %v917_v24 = vpop.f32.mrf.mxu2 }
 0x411   : > { %v920_v26 = vpop.f32.mrf.mxu2 }
 0x46a   : > { %v845_v6 = vpop.f32.mrf.mxu1 }
 0x46b   : > { %v846_v20 = vadd.f32 %v1732_v18, %v845_v6  ;;  %v716_v6 = vld [vmem:[#allocation4 + $0x8] sm:$0xff] }
 0x46c   : > { %1753 = vmatmul.msk.f32.gmra.mxu0 %vm538_vm2, %v716_v6 }
 0x472   : > { %v848_v8 = vpop.f32.mrf.mxu1 }
 0x473   : > { %v849_v9 = vadd.f32 %v1733_v7, %v848_v8  ;;  %v1103_v7 = vld [vmem:[#allocation2 + $0x48] sm:$0xff]  ;;  %v930_v8 = vld [vmem:[#allocation4 + $0x30] sm:$0xff] }
 0x475   : > { %869 = vperm.xlu1 %1860, %v849_v9   ;;  %v717_v9 = vld [vmem:[#allocation4 + $0x10] sm:$0xff] }
 0x476   : > { %1754 = vmatmul.msk.f32.gmra.mxu0 %vm538_vm2, %v717_v9 }
 0x47a   : > { %v851_v11 = vpop.f32.mrf.mxu1 }
 0x47b   : > { %v852_v13 = vadd.f32 %v1734_v10, %v851_v11  ;;  %v1104_v10 = vld [vmem:[#allocation2 + $0x50] sm:$0xff]  ;;  %v931_v11 = vld [vmem:[#allocation4 + $0x38] sm:$0xff] }
 0x47d   : > { %874 = vperm.xlu2 %1861, %v852_v13   ;;  %1031 = vperm.xlu1 %1860, %v1761_v12   ;;  %v718_v12 = vld [vmem:[#allocation4 + $0x18] sm:$0xff] }
 0x47e   : > { %1755 = vmatmul.msk.f32.gmra.mxu0 %vm538_vm2, %v718_v12  ;;  %v1105_v13 = vld [vmem:[#allocation2 + $0x58] sm:$0xff] }
 0x482   : > { %v854_v15 = vpop.f32.mrf.mxu1 }
 0x483   : > { %v855_v17 = vadd.f32 %v1735_v14, %v854_v15  ;;  %v1776_v14 = vld [vmem:[%s2387_s5 + $0x40] sm:$0xff]  ;;  %v1777_v15 = vld [vmem:[%s2387_s5 + $0x48] sm:$0xff] }
 0x485   : > { %879 = vperm.xlu0 %1859, %v855_v17   ;;  %1041 = vperm.xlu2 %1861, %v1763_v16   ;;  %v1778_v16 = vld [vmem:[%s2387_s5 + $0x50] sm:$0xff]  ;;  %v1779_v17 = vld [vmem:[%s2387_s5 + $0x58] sm:$0xff] }
 0x48d   : > { %1026 = vperm.xlu2 %1861, %v1760_v19   ;;  %864 = vperm.xlu0 %1859, %v846_v20   ;;  %v1769_v19 = vld [vmem:[%s2389_s7 + $0x48] sm:$0xff] }
 0x495   : > { %1036 = vperm.xlu0 %1859, %v1762_v21  }
 0x4d7   : > { %v875_v25 = vpop.permute.xlu2 %874 }
 0x4d8   : > { %v918_v29 = vadd.f32 %v917_v24, %v875_v25  ;;  %v1795_v24 = vld [vmem:[%s2386_s4 + $0x78] sm:$0xff] }
 0x4da   : > { %v925_v33 = vmax.f32 %v918_v29, 0.0 }
 0x4df   : > { %v1042_v51 = vpop.permute.xlu2 %1041 }
 0x4e7   : > { %v870_v27 = vpop.permute.xlu1 %869  ;;  %v1027_v57 = vpop.permute.xlu2 %1026 }
 0x4e8   : > { %v915_v31 = vadd.f32 %v914_v23, %v870_v27 }
 0x4ea   : > { %v924_v34 = vmax.f32 %v915_v31, 0.0  ;;  %v1768_v31 = vld [vmem:[%s2389_s7 + $0x40] sm:$0xff] }
 0x4ef   : > { %v1032_v43 = vpop.permute.xlu1 %1031 }
 0x4f7   : > { %v880_v28 = vpop.permute.xlu0 %879 }
 0x4f8   : > { %v921_v30 = vadd.f32 %v920_v26, %v880_v28  ;;  %v1771_v26 = vld [vmem:[%s2389_s7 + $0x58] sm:$0xff]  ;;  %v1794_v28 = vld [vmem:[%s2386_s4 + $0x70] sm:$0xff] }
 0x4fa   : > { %v926_v32 = vmax.f32 %v921_v30, 0.0  ;;  %v1792_v30 = vld [vmem:[%s2386_s4 + $0x60] sm:$0xff] }
 0x4fc   : > { %956 = vmatpush.msra.mxu3 %v926_v32  ;;  %1068 = vmatpush.msrb.mxu1 %v926_v32 }
 0x4fe   : > { %957 = vmatpush.msra.mxu3 %v925_v33  ;;  %1069 = vmatpush.msrb.mxu1 %v925_v33  ;;  %v1793_v33 = vld [vmem:[%s2386_s4 + $0x68] sm:$0xff] }
 0x4ff   : > { %v865_v35 = vpop.permute.xlu0 %864 }
 0x500   : > { %v912_v36 = vadd.f32 %v911_v22, %v865_v35  ;;  %958 = vmatpush.msra.mxu3 %v924_v34  ;;  %1070 = vmatpush.msrb.mxu1 %v924_v34  ;;  %v1770_v22 = vld [vmem:[%s2389_s7 + $0x50] sm:$0xff] }
 0x502   : > { %v923_v37 = vmax.f32 %v912_v36, 0.0 }
 0x504   : > { %959 = vmatpush.msra.mxu3 %v923_v37  ;;  %1071 = vmatpush.msrb.mxu1 %v923_v37 }
 0x505   : > { %1764 = vmatmul.msk.f32.vlgmr.msrb.gmra.mxu1 %vm538_vm2, %v1756_v38  ;;  %1748 = vmatmul.msk.f32.vlgmr.msra.gmra.mxu3 %vm538_vm2, %v928_v0 }
 0x507   : > { %v1037_v48 = vpop.permute.xlu0 %1036 }
 0x50d   : > { %1765 = vmatmul.msk.f32.gmra.mxu1 %vm538_vm2, %v1757_v39  ;;  %1749 = vmatmul.msk.f32.gmra.mxu3 %vm538_vm2, %v929_v5 }
 0x515   : > { %1766 = vmatmul.msk.f32.gmra.mxu1 %vm538_vm2, %v1758_v40  ;;  %1750 = vmatmul.msk.f32.gmra.mxu3 %vm538_vm2, %v930_v8 }
 0x51d   : > { %1767 = vmatmul.msk.f32.gmra.mxu1 %vm538_vm2, %v1759_v41  ;;  %1751 = vmatmul.msk.f32.gmra.mxu3 %vm538_vm2, %v931_v11 }
 0x582   : > { %v1073_v42 = vpop.f32.mrf.mxu1 }
 0x583   : > { %v1074_v58 = vadd.f32 %v1073_v42, %v1027_v57  ;;  %v1789_v57 = vld [vmem:[%s2385_s3 + $0x68] sm:$0xff] }
 0x585   : > { %v1085_v60 = vmax.f32 %v1074_v58, 0.0  ;;  %v1225_v58 = vld [vmem:[#allocation4 + $0x50] sm:$0xff] }
 0x587   : > { %v1089_v61 = vsel %vm584_vm3, %v1085_v60, -inf }
 0x588   : > { %v2276_v34 = vpop.f32.mrf.mxu3 }
 0x58a   : > { %v1076_v44 = vpop.f32.mrf.mxu1 }
 0x58b   : > { %v1077_v45 = vadd.f32 %v1076_v44, %v1032_v43 }
 0x58d   : > { %v1086_v46 = vmax.f32 %v1077_v45, 0.0 }
 0x58f   : > { %v1092_v47 = vsel %vm584_vm3, %v1086_v46, -inf }
 0x590   : > { %1093 = vmax.xlane.f32.xlu2 %v1092_v47  ;;  %v2278_v35 = vpop.f32.mrf.mxu3 }
 0x592   : > { %v1079_v49 = vpop.f32.mrf.mxu1 }
 0x593   : > { %v1080_v50 = vadd.f32 %v1079_v49, %v1037_v48 }
 0x595   : > { %v1087_v52 = vmax.f32 %v1080_v50, 0.0 }
 0x597   : > { %v1095_v53 = vsel %vm584_vm3, %v1087_v52, -inf }
 0x598   : > { %1096 = vmax.xlane.f32.xlu1 %v1095_v53  ;;  %v2280_v36 = vpop.f32.mrf.mxu3 }
 0x59a   : > { %v1082_v54 = vpop.f32.mrf.mxu1 }
 0x59b   : > { %v1083_v55 = vadd.f32 %v1082_v54, %v1042_v51  ;;  %v1223_v54 = vld [vmem:[#allocation4 + $0x40] sm:$0xff] }
 0x59d   : > { %v1088_v56 = vmax.f32 %v1083_v55, 0.0  ;;  %v1788_v55 = vld [vmem:[%s2385_s3 + $0x60] sm:$0xff] }
 0x59f   : > { %1201 = vmatpush.msrb.mxu3 %v1088_v56  ;;  %v1098_v59 = vsel %vm584_vm3, %v1088_v56, -inf  ;;  %v1224_v56 = vld [vmem:[#allocation4 + $0x48] sm:$0xff] }
 0x5a0   : > { %1099 = vmax.xlane.f32.xlu0 %v1098_v59  ;;  %v2282_v37 = vpop.f32.mrf.mxu3  ;;  %v1790_v59 = vld [vmem:[%s2385_s3 + $0x70] sm:$0xff] }
 0x5a1   : > { %1202 = vmatpush.msrb.mxu3 %v1087_v52 }
 0x5a3   : > { %1203 = vmatpush.msrb.mxu3 %v1086_v46 }
 0x5a5   : > { %1204 = vmatpush.msrb.mxu3 %v1085_v60  ;;  %v1226_v60 = vld [vmem:[#allocation4 + $0x58] sm:$0xff] }
 0x5a6   : > { %1780 = vmatmul.msk.f32.vlgmr.msrb.gmra.mxu3 %vm538_vm2, %v1776_v14 }
 0x5a8   : > { %1090 = vmax.xlane.f32.xlu0 %v1089_v61  ;;  %v1791_v61 = vld [vmem:[%s2385_s3 + $0x78] sm:$0xff] }
 0x5ae   : > { %1781 = vmatmul.msk.f32.gmra.mxu3 %vm538_vm2, %v1777_v15 }
 0x5b6   : > { %1782 = vmatmul.msk.f32.gmra.mxu3 %vm538_vm2, %v1778_v16 }
 0x5be   : > { %1783 = vmatmul.msk.f32.gmra.mxu3 %vm538_vm2, %v1779_v17 }
 0x603   : > { %v1094_v2 = vpop.xlane.xlu2 %1093 }
 0x60b   : > { %v1097_v63 = vpop.xlane.xlu1 %1096 }
 0x613   : > { %v1100_v62 = vpop.xlane.xlu0 %1099 }
 0x614   : > { %1135 = vmatpush.msrb.mxu2 %v1100_v62 }
 0x616   : > { %1136 = vmatpush.msrb.mxu2 %v1097_v63 }
 0x618   : > { %1137 = vmatpush.msrb.mxu2 %v1094_v2 }
 0x61b   : > { %v1091_v4 = vpop.xlane.xlu0 %1090 }
 0x61c   : > { %1138 = vmatpush.msrb.mxu2 %v1091_v4 }
 0x61d   : > { %1772 = vmatmul.msk.f32.vlgmr.msrb.gmra.mxu2 %vm538_vm2, %v1102_v3 }
 0x625   : > { %1773 = vmatmul.msk.f32.gmra.mxu2 %vm538_vm2, %v1103_v7 }
 0x629   : > { %v1206_v38 = vpop.f32.mrf.mxu3 }
 0x62d   : > { %1774 = vmatmul.msk.f32.gmra.mxu2 %vm538_vm2, %v1104_v10 }
 0x631   : > { %v1209_v39 = vpop.f32.mrf.mxu3 }
 0x635   : > { %1775 = vmatmul.msk.f32.gmra.mxu2 %vm538_vm2, %v1105_v13 }
 0x639   : > { %v1212_v40 = vpop.f32.mrf.mxu3 }
 0x641   : > { %v1215_v42 = vpop.f32.mrf.mxu3 }
 0x6a0   : > { %v1140_v18 = vpop.f32.mrf.mxu2 }
 0x6a1   : > { %v1141_v32 = vadd.f32 %v1768_v31, %v1140_v18  ;;  %v1801_v31 = vld [vmem:[%s2389_s7 + $0x68] sm:$0xff] }
 0x6a8   : > { %v1143_v20 = vpop.f32.mrf.mxu2 }
 0x6a9   : > { %v1144_v21 = vadd.f32 %v1769_v19, %v1143_v20  ;;  %v1808_v20 = vld [vmem:[%s2387_s5 + $0x60] sm:$0xff] }
 0x6ab   : > { %1164 = vperm.xlu0 %1859, %v1144_v21  }
 0x6b0   : > { %v1146_v23 = vpop.f32.mrf.mxu2 }
 0x6b1   : > { %v1147_v25 = vadd.f32 %v1770_v22, %v1146_v23  ;;  %v1360_v22 = vld [vmem:[#allocation2 + $0x60] sm:$0xff] }
 0x6b3   : > { %1169 = vperm.xlu2 %1861, %v1147_v25   ;;  %1299 = vperm.xlu0 %1859, %v1795_v24   ;;  %v1809_v24 = vld [vmem:[%s2387_s5 + $0x68] sm:$0xff] }
 0x6b4   : > { %v1361_v25 = vld [vmem:[#allocation2 + $0x68] sm:$0xff] }
 0x6b8   : > { %v1149_v27 = vpop.f32.mrf.mxu2 }
 0x6b9   : > { %v1150_v29 = vadd.f32 %v1771_v26, %v1149_v27  ;;  %v1362_v26 = vld [vmem:[#allocation2 + $0x70] sm:$0xff]  ;;  %v1363_v27 = vld [vmem:[#allocation2 + $0x78] sm:$0xff] }
 0x6bb   : > { %1174 = vperm.xlu1 %1860, %v1150_v29   ;;  %1294 = vperm.xlu2 %1861, %v1794_v28   ;;  %v1810_v28 = vld [vmem:[%s2387_s5 + $0x70] sm:$0xff]  ;;  %v1811_v29 = vld [vmem:[%s2387_s5 + $0x78] sm:$0xff] }
 0x6bc   : > { %1284 = vperm.xlu0 %1859, %v1792_v30  }
 0x6c3   : > { %1159 = vperm.xlu1 %1860, %v1141_v32  }
 0x6cb   : > { %1289 = vperm.xlu1 %1860, %v1793_v33  }
 0x70d   : > { %v1170_v41 = vpop.permute.xlu2 %1169 }
 0x70e   : > { %v1213_v45 = vadd.f32 %v1212_v40, %v1170_v41  ;;  %v1531_v40 = vld [vmem:[%s2391_s9 + $0x8] sm:$0xff] }
 0x710   : > { %v1220_v49 = vmax.f32 %v1213_v45, 0.0 }
 0x715   : > { %v1295_v4 = vpop.permute.xlu2 %1294 }
 0x71d   : > { %v1165_v43 = vpop.permute.xlu0 %1164 }
 0x71e   : > { %v1210_v47 = vadd.f32 %v1209_v39, %v1165_v43  ;;  %v1803_v43 = vld [vmem:[%s2389_s7 + $0x78] sm:$0xff] }
 0x720   : > { %v1219_v50 = vmax.f32 %v1210_v47, 0.0  ;;  %v1530_v47 = vld [vmem:[%s2391_s9] sm:$0xff] }
 0x725   : > { %v1300_v7 = vpop.permute.xlu0 %1299 }
 0x72d   : > { %v1175_v44 = vpop.permute.xlu1 %1174 }
 0x72e   : > { %v1216_v46 = vadd.f32 %v1215_v42, %v1175_v44  ;;  %v1285_v13 = vpop.permute.xlu0 %1284  ;;  %v1800_v42 = vld [vmem:[%s2389_s7 + $0x60] sm:$0xff] }
 0x730   : > { %v1221_v48 = vmax.f32 %v1216_v46, 0.0 }
 0x732   : > { %1251 = vmatpush.msrb.mxu0 %v1221_v48  ;;  %1326 = vmatpush.msra.mxu1 %v1221_v48  ;;  %v1532_v48 = vld [vmem:[%s2391_s9 + $0x10] sm:$0xff] }
 0x734   : > { %1252 = vmatpush.msrb.mxu0 %v1220_v49  ;;  %1327 = vmatpush.msra.mxu1 %v1220_v49  ;;  %v1533_v49 = vld [vmem:[%s2391_s9 + $0x18] sm:$0xff] }
 0x735   : > { %v1160_v51 = vpop.permute.xlu1 %1159 }
 0x736   : > { %v1207_v52 = vadd.f32 %v1206_v38, %v1160_v51  ;;  %1253 = vmatpush.msrb.mxu0 %v1219_v50  ;;  %1328 = vmatpush.msra.mxu1 %v1219_v50  ;;  %v1802_v38 = vld [vmem:[%s2389_s7 + $0x70] sm:$0xff] }
 0x738   : > { %v1218_v53 = vmax.f32 %v1207_v52, 0.0 }
 0x73a   : > { %1254 = vmatpush.msrb.mxu0 %v1218_v53  ;;  %1329 = vmatpush.msra.mxu1 %v1218_v53 }
 0x73b   : > { %1784 = vmatmul.msk.f32.vlgmr.msrb.gmra.mxu0 %vm538_vm2, %v1223_v54  ;;  %1796 = vmatmul.msk.f32.vlgmr.msra.gmra.mxu1 %vm538_vm2, %v1788_v55 }
 0x73d   : > { %v1290_v63 = vpop.permute.xlu1 %1289 }
 0x743   : > { %1785 = vmatmul.msk.f32.gmra.mxu0 %vm538_vm2, %v1224_v56  ;;  %1797 = vmatmul.msk.f32.gmra.mxu1 %vm538_vm2, %v1789_v57 }
 0x74b   : > { %1786 = vmatmul.msk.f32.gmra.mxu0 %vm538_vm2, %v1225_v58  ;;  %1798 = vmatmul.msk.f32.gmra.mxu1 %vm538_vm2, %v1790_v59 }
 0x753   : > { %1787 = vmatmul.msk.f32.gmra.mxu0 %vm538_vm2, %v1226_v60  ;;  %1799 = vmatmul.msk.f32.gmra.mxu1 %vm538_vm2, %v1791_v61 }
 0x7b8   : > { %v1331_v62 = vpop.f32.mrf.mxu1 }
 0x7b9   : > { %v1332_v14 = vadd.f32 %v1331_v62, %v1285_v13 }
 0x7bb   : > { %v1343_v16 = vmax.f32 %v1332_v14, 0.0 }
 0x7bd   : > { %v1347_v17 = vsel %vm584_vm3, %v1343_v16, -inf }
 0x7c0   : > { %v1334_v0 = vpop.f32.mrf.mxu1 }
 0x7c1   : > { %v1335_v1 = vadd.f32 %v1334_v0, %v1290_v63 }
 0x7c3   : > { %v1344_v2 = vmax.f32 %v1335_v1, 0.0 }
 0x7c5   : > { %v1350_v3 = vsel %vm584_vm3, %v1344_v2, -inf }
 0x7c6   : > { %1351 = vmax.xlane.f32.xlu0 %v1350_v3  ;;  %v1482_v3 = vld [vmem:[#allocation4 + $0x68] sm:$0xff] }
 0x7c8   : > { %v1337_v5 = vpop.f32.mrf.mxu1 }
 0x7c9   : > { %v1338_v6 = vadd.f32 %v1337_v5, %v1295_v4  ;;  %v1483_v4 = vld [vmem:[#allocation4 + $0x70] sm:$0xff]  ;;  %v1484_v5 = vld [vmem:[#allocation4 + $0x78] sm:$0xff] }
 0x7cb   : > { %v1345_v8 = vmax.f32 %v1338_v6, 0.0  ;;  %v1002_v6 = vpop.f32.mrf.mxu0 }
 0x7cc   : > { %v1003_v14 = vadd.f32 %v1002_v6, %v2276_v34 }
 0x7cd   : > { %v1353_v9 = vsel %vm584_vm3, %v1345_v8, -inf }
 0x7ce   : > { %1354 = vmax.xlane.f32.xlu1 %v1353_v9 }
 0x7d0   : > { %v1340_v10 = vpop.f32.mrf.mxu1 }
 0x7d1   : > { %v1341_v11 = vadd.f32 %v1340_v10, %v1300_v7 }
 0x7d3   : > { %v1346_v12 = vmax.f32 %v1341_v11, 0.0  ;;  %v1005_v7 = vpop.f32.mrf.mxu0 }
 0x7d5   : > { %1459 = vmatpush.msra.mxu3 %v1346_v12  ;;  %v1356_v15 = vsel %vm584_vm3, %v1346_v12, -inf }
 0x7d6   : > { %1357 = vmax.xlane.f32.xlu2 %v1356_v15 }
 0x7d7   : > { %1460 = vmatpush.msra.mxu3 %v1345_v8 }
 0x7d9   : > { %1461 = vmatpush.msra.mxu3 %v1344_v2  ;;  %v1481_v2 = vld [vmem:[#allocation4 + $0x60] sm:$0xff] }
 0x7db   : > { %1462 = vmatpush.msra.mxu3 %v1343_v16  ;;  %v1008_v8 = vpop.f32.mrf.mxu0 }
 0x7dc   : > { %1812 = vmatmul.msk.f32.vlgmr.msra.gmra.mxu3 %vm538_vm2, %v1808_v20  ;;  %v1006_v20 = vadd.f32 %v1005_v7, %v2278_v35 }
 0x7de   : > { %1348 = vmax.xlane.f32.xlu2 %v1347_v17 }
 0x7e3   : > { %v1011_v9 = vpop.f32.mrf.mxu0 }
 0x7e4   : > { %1813 = vmatmul.msk.f32.gmra.mxu3 %vm538_vm2, %v1809_v24 }
 0x7eb   : > { %v1256_v10 = vpop.f32.mrf.mxu0 }
 0x7ec   : > { %1814 = vmatmul.msk.f32.gmra.mxu3 %vm538_vm2, %v1810_v28  ;;  %v1268_v15 = vadd.f32 %v1256_v10, %v1003_v14 }
 0x7f3   : > { %v1259_v11 = vpop.f32.mrf.mxu0 }
 0x7f4   : > { %1815 = vmatmul.msk.f32.gmra.mxu3 %vm538_vm2, %v1811_v29 }
 0x7fb   : > { %v1262_v12 = vpop.f32.mrf.mxu0 }
 0x803   : > { %v1265_v13 = vpop.f32.mrf.mxu0 }
 0x839   : > { %v1352_v21 = vpop.xlane.xlu0 %1351 }
 0x841   : > { %v1355_v19 = vpop.xlane.xlu1 %1354 }
 0x849   : > { %v1358_v18 = vpop.xlane.xlu2 %1357 }
 0x84a   : > { %1393 = vmatpush.msra.mxu2 %v1358_v18 }
 0x84c   : > { %1394 = vmatpush.msra.mxu2 %v1355_v19 }
 0x84e   : > { %1395 = vmatpush.msra.mxu2 %v1352_v21 }
 0x851   : > { %v1349_v23 = vpop.xlane.xlu2 %1348 }
 0x852   : > { %1396 = vmatpush.msra.mxu2 %v1349_v23 }
 0x853   : > { %1804 = vmatmul.msk.f32.vlgmr.msra.gmra.mxu2 %vm538_vm2, %v1360_v22  ;;  %v1269_v22 = vadd.f32 %v1259_v11, %v1006_v20 }
 0x85b   : > { %1805 = vmatmul.msk.f32.gmra.mxu2 %vm538_vm2, %v1361_v25 }
 0x85f   : > { %v1464_v50 = vpop.f32.mrf.mxu3 }
 0x863   : > { %1806 = vmatmul.msk.f32.gmra.mxu2 %vm538_vm2, %v1362_v26  ;;  %v1009_v26 = vadd.f32 %v1008_v8, %v2280_v36 }
 0x865   : > { %v1270_v28 = vadd.f32 %v1262_v12, %v1009_v26 }
 0x867   : > { %v1467_v51 = vpop.f32.mrf.mxu3 }
 0x86b   : > { %1807 = vmatmul.msk.f32.gmra.mxu2 %vm538_vm2, %v1363_v27 }
 0x86f   : > { %v1470_v52 = vpop.f32.mrf.mxu3 }
 0x877   : > { %v1473_v54 = vpop.f32.mrf.mxu3 }
 0x8d6   : > { %v1398_v30 = vpop.f32.mrf.mxu2 }
 0x8d7   : > { %v1399_v45 = vadd.f32 %v1800_v42, %v1398_v30 }
 0x8de   : > { %v1401_v32 = vpop.f32.mrf.mxu2 }
 0x8df   : > { %v1402_v33 = vadd.f32 %v1801_v31, %v1401_v32  ;;  %v1012_v32 = vadd.f32 %v1011_v9, %v2282_v37 }
 0x8e1   : > { %1422 = vperm.xlu2 %1861, %v1402_v33  }
 0x8e6   : > { %v1404_v39 = vpop.f32.mrf.mxu2 }
 0x8e7   : > { %v1405_v41 = vadd.f32 %v1802_v38, %v1404_v39  ;;  %v1271_v38 = vadd.f32 %v1265_v13, %v1012_v32 }
 0x8e9   : > { %1427 = vperm.xlu0 %1859, %v1405_v41   ;;  %1541 = vperm.xlu2 %1861, %v1531_v40  }
 0x8ee   : > { %v1407_v44 = vpop.f32.mrf.mxu2 }
 0x8ef   : > { %v1408_v46 = vadd.f32 %v1803_v43, %v1407_v44 }
 0x8f1   : > { %1432 = vperm.xlu1 %1860, %v1408_v46   ;;  %1417 = vperm.xlu0 %1859, %v1399_v45  }
 0x8f9   : > { %1536 = vperm.xlu1 %1860, %v1530_v47   ;;  %1546 = vperm.xlu0 %1859, %v1532_v48  }
 0x901   : > { %1551 = vperm.xlu1 %1860, %v1533_v49  }
 0x93b   : > { %v1423_v55 = vpop.permute.xlu2 %1422 }
 0x93c   : > { %v1468_v60 = vadd.f32 %v1467_v51, %v1423_v55 }
 0x93e   : > { %v1477_v0 = vmax.f32 %v1468_v60, 0.0 }
 0x943   : > { %v1542_v24 = vpop.permute.xlu2 %1541 }
 0x95b   : > { %v1428_v53 = vpop.permute.xlu0 %1427 }
 0x95c   : > { %v1471_v57 = vadd.f32 %v1470_v52, %v1428_v53 }
 0x95e   : > { %v1478_v62 = vmax.f32 %v1471_v57, 0.0 }
 0x963   : > { %v1433_v56 = vpop.permute.xlu1 %1432  ;;  %v1418_v59 = vpop.permute.xlu0 %1417 }
 0x964   : > { %v1474_v58 = vadd.f32 %v1473_v54, %v1433_v56  ;;  %v1465_v63 = vadd.f32 %v1464_v50, %v1418_v59 }
 0x966   : > { %v1479_v61 = vmax.f32 %v1474_v58, 0.0  ;;  %v1476_v1 = vmax.f32 %v1465_v63, 0.0 }
 0x968   : > { %1509 = vmatpush.msra.mxu0 %v1479_v61 }
 0x96a   : > { %1510 = vmatpush.msra.mxu0 %v1478_v62 }
 0x96b   : > { %v1537_v18 = vpop.permute.xlu1 %1536  ;;  %v1547_v30 = vpop.permute.xlu0 %1546 }
 0x96c   : > { %1511 = vmatpush.msra.mxu0 %v1477_v0 }
 0x96e   : > { %1512 = vmatpush.msra.mxu0 %v1476_v1 }
 0x96f   : > { %1816 = vmatmul.msk.f32.vlgmr.msra.gmra.mxu0 %vm538_vm2, %v1481_v2 }
 0x973   : > { %v1552_v40 = vpop.permute.xlu1 %1551 }
 0x977   : > { %1817 = vmatmul.msk.f32.gmra.mxu0 %vm538_vm2, %v1482_v3 }
 0x97f   : > { %1818 = vmatmul.msk.f32.gmra.mxu0 %vm538_vm2, %v1483_v4 }
 0x987   : > { %1819 = vmatmul.msk.f32.gmra.mxu0 %vm538_vm2, %v1484_v5 }
 0x9ec   : > { %v1514_v16 = vpop.f32.mrf.mxu0 }
 0x9ed   : > { %v1526_v17 = vadd.f32 %v1514_v16, %v1268_v15 }
 0x9ef   : > { %v1554_v19 = vadd.f32 %v1537_v18, %v1526_v17 }
 0x9f1   : > { %v1562_v21 = vsel %vm584_vm3, %v1554_v19, -inf  ;;  %1558 = vst.msk [vmem:[%s430_s20] sm:$0xff] %vm584_vm3, %v1554_v19 }
 0x9f2   : > { %1563 = vmax.xlane.f32.xlu2 %v1562_v21 }
 0x9f4   : > { %v1517_v34 = vpop.f32.mrf.mxu0 }
 0x9f5   : > { %v1527_v23 = vadd.f32 %v1517_v34, %v1269_v22 }
 0x9f7   : > { %v1555_v25 = vadd.f32 %v1542_v24, %v1527_v23 }
 0x9f9   : > { %v1565_v27 = vsel %vm584_vm3, %v1555_v25, -inf  ;;  %1559 = vst.msk [vmem:[%s430_s20 + $0x8] sm:$0xff] %vm584_vm3, %v1555_v25 }
 0x9fa   : > { %1566 = vmax.xlane.f32.xlu0 %v1565_v27 }
 0x9fc   : > { %v1520_v29 = vpop.f32.mrf.mxu0 }
 0x9fd   : > { %v1528_v35 = vadd.f32 %v1520_v29, %v1270_v28 }
 0x9ff   : > { %v1556_v31 = vadd.f32 %v1547_v30, %v1528_v35 }
 0xa01   : > { %v1568_v33 = vsel %vm584_vm3, %v1556_v31, -inf  ;;  %1560 = vst.msk [vmem:[%s430_s20 + $0x10] sm:$0xff] %vm584_vm3, %v1556_v31 }
 0xa02   : > { %1569 = vmax.xlane.f32.xlu1 %v1568_v33 }
 0xa04   : > { %v1523_v36 = vpop.f32.mrf.mxu0 }
 0xa05   : > { %v1529_v39 = vadd.f32 %v1523_v36, %v1271_v38 }
 0xa07   : > { %v1557_v41 = vadd.f32 %v1552_v40, %v1529_v39 }
 0xa09   : > { %v1571_v42 = vsel %vm584_vm3, %v1557_v41, -inf  ;;  %1561 = vst.msk [vmem:[%s430_s20 + $0x18] sm:$0xff] %vm584_vm3, %v1557_v41 }
 0xa0a   : > { %1572 = vmax.xlane.f32.xlu2 %v1571_v42 }
 0xa65   : > { %v1564_v37 = vpop.xlane.xlu2 %1563 }
 0xa66   : > { %1575 = vst.msk [vmem:[%s425_s24] sm:$0xff] %vm1574_vm4, %v1564_v37 }
 0xa6d   : > { %v1567_v43 = vpop.xlane.xlu0 %1566 }
 0xa6e   : > { %1576 = vst.msk [vmem:[%s425_s24 + $0x8] sm:$0xff] %vm1574_vm4, %v1567_v43 }
 0xa75   : > { %v1570_v44 = vpop.xlane.xlu1 %1569 }
 0xa76   : > { %1577 = vst.msk [vmem:[%s425_s24 + $0x10] sm:$0xff] %vm1574_vm4, %v1570_v44 }
 0xa7d   : > { %v1573_v45 = vpop.xlane.xlu2 %1572 }
 0xa7e   : > { %1578 = vst.msk [vmem:[%s425_s24 + $0x18] sm:$0xff] %vm1574_vm4, %v1573_v45 }
 0xa7f PF: > { %s24_s17 = sadd.s32 1, %s1936_s17  }
 0xa80   : > { %p21_p7 = scmp.ge.s32.totalorder %s24_s17, 4  }
 0xa82   :  { %23 = sbr.rel (!%p21_p7) target bundleno = 2 (0x2), region = 129 }
 0xa87   :  { %1616 = vsyncpa [#allocation3], 1 }
 0xa88   :  { %1618 = vsyncpa [#allocation3 + $0x1], 1 }
 0xa89   :  { %1619 = vsyncpa [#allocation5], 1 }

</bundles_post_ra>
